<compile_context>
chip_gen: v7x
topology: tpu7x:2x2x1
jax: 0.10.0
libtpu: 0.0.40
codegen_flags: <defaults>
</compile_context>

<pallas_src>
import functools

import jax
import jax.numpy as jnp
from jax.experimental import pallas as pl
from jax.experimental.pallas import tpu as pltpu


# ---------------------------------------------------------------------------
# Kernel
# ---------------------------------------------------------------------------
def _classifier_kernel(
    x_ref,                      # (24, tb)  f32   (batch on lanes)
    w1_ref, b1_ref,             # (128, 24) bf16, (128, 1) f32
    w2_ref, b2_ref,             # (64, 128) bf16, (64, 1)  f32
    w3_ref, b3_ref,             # (16, 64)  bf16, (16, 1)  f32
    w4_ref, b4_ref,             # (4, 16)   bf16, (4, 1)   f32
    out_ref,                    # (4, tb)   f32
):
    """One batch tile: fused 4-layer MLP (BN pre-folded into weights) + softmax.

    Everything is feature-major: h has shape (features, batch_tile).  Matmuls use
    bf16 operands with f32 accumulation; bias/ReLU/softmax run in f32.
    """
    x = x_ref[...].astype(jnp.bfloat16)

    # Linear(24,128) + ReLU            [Dropout identity in eval]
    h = jnp.dot(w1_ref[...], x, preferred_element_type=jnp.float32) + b1_ref[...]
    h = jnp.maximum(h, 0.0)
    # Linear(128,64) + ReLU            [BN1 folded into W2/b2]
    h = jnp.dot(w2_ref[...], h.astype(jnp.bfloat16),
                preferred_element_type=jnp.float32) + b2_ref[...]
    h = jnp.maximum(h, 0.0)
    # Linear(64,16) + ReLU             [BN2 folded into W3/b3]
    h = jnp.dot(w3_ref[...], h.astype(jnp.bfloat16),
                preferred_element_type=jnp.float32) + b3_ref[...]
    h = jnp.maximum(h, 0.0)
    # Linear(16,4)                     [BN3 folded into W4/b4]
    logits = jnp.dot(w4_ref[...], h.astype(jnp.bfloat16),
                     preferred_element_type=jnp.float32) + b4_ref[...]

    # Softmax over the class axis (axis 0 here == PyTorch dim=1): a 4-row sublane reduce.
    m = jnp.max(logits, axis=0, keepdims=True)
    e = jnp.exp(logits - m)
    denom = jnp.sum(e, axis=0, keepdims=True)
    out_ref[...] = e * pl.reciprocal(denom, approx=True)   # EUP vrcp


# ---------------------------------------------------------------------------
# Parameter preparation (runs ONCE, outside the jitted forward)
# ---------------------------------------------------------------------------
def fold_batchnorm(params):
    """Fold eval-mode BN (scale, shift) pairs into the *next* Linear layer (exact)."""
    folded = {"w1": params["w1"], "b1": params["b1"]}
    for prev, cur in ((1, 2), (2, 3), (3, 4)):
        s = params[f"s{prev}"]          # (1, n)
        t = params[f"t{prev}"]          # (1, n)
        w = params[f"w{cur}"]           # (n, m)
        b = params[f"b{cur}"]           # (1, m)
        folded[f"w{cur}"] = w * s.reshape(-1, 1)   # diag(s) @ W
        folded[f"b{cur}"] = b + t @ w              # b + t @ W
    return folded


def prepare_params(params):
    """BN-fold, transpose to (out,in), cast weights to bf16, biases to (out,1) f32."""
    folded = fold_batchnorm(params)
    prepared = {}
    for li in (1, 2, 3, 4):
        prepared[f"w{li}"] = jnp.asarray(folded[f"w{li}"]).T.astype(jnp.bfloat16)
        prepared[f"b{li}"] = jnp.asarray(folded[f"b{li}"]).reshape(-1, 1).astype(jnp.float32)
    return prepared


# ---------------------------------------------------------------------------
# Tiling helpers
# ---------------------------------------------------------------------------
def _cdiv(a, b):
    return -(-a // b)


def _round_up(n, m):
    return _cdiv(n, m) * m


def _choose_tiling(batch, tile_b):
    """Batch lives on the lane axis: tiles are 128-lane aligned (or the full extent)."""
    b_lanes = _round_up(batch, 128)
    if b_lanes <= 384:
        # Too small to be worth splitting across grid steps / TensorCores.
        return b_lanes, b_lanes
    tb = min(_round_up(tile_b, 128), b_lanes)
    # >= 2 grid steps so dimension_semantics=("parallel",) can shard the batch across
    # both TensorCores on v7x; rebalance the tile so tail padding stays small.
    n_steps = max(2, _cdiv(b_lanes, tb))
    tb = _round_up(_cdiv(b_lanes, n_steps), 128)
    return tb, _round_up(b_lanes, tb)


# ---------------------------------------------------------------------------
# Forward
# ---------------------------------------------------------------------------
@functools.partial(jax.jit, static_argnames=("tile_b",))
def classifier_kpts_forward(x, prepared, *, tile_b=4096):
    """x: (B, 24) float32.  prepared: dict from prepare_params.  Returns (B, 4) probs."""
    B = x.shape[0]
    tb, b_pad = _choose_tiling(B, tile_b)

    if b_pad != B:
        x = jnp.pad(x, ((0, b_pad - B), (0, 0)))
    # Layout plumbing: feature-major input so the batch lands on lanes inside the kernel.
    x_t = x.T                                           # (24, b_pad) f32

    def resident(shape):
        # Constant block index -> parameter stays VMEM-resident across grid steps.
        return pl.BlockSpec(shape, lambda i: (0, 0))

    out_t = pl.pallas_call(
        _classifier_kernel,
        out_shape=jax.ShapeDtypeStruct((4, b_pad), jnp.float32),
        grid=(b_pad // tb,),
        in_specs=[
            pl.BlockSpec((24, tb), lambda i: (0, i)),   # batch-tiled input (lane-dense)
            resident((128, 24)), resident((128, 1)),
            resident((64, 128)), resident((64, 1)),
            resident((16, 64)), resident((16, 1)),
            resident((4, 16)), resident((4, 1)),
        ],
        out_specs=pl.BlockSpec((4, tb), lambda i: (0, i)),   # lane-dense output slab
        compiler_params=pltpu.CompilerParams(
            dimension_semantics=("parallel",),          # megacore sharding on v7x
        ),
    )(
        x_t,
        prepared["w1"], prepared["b1"],
        prepared["w2"], prepared["b2"],
        prepared["w3"], prepared["b3"],
        prepared["w4"], prepared["b4"],
    )
    return out_t[:, :B].T                               # (B, 4)


# ---------------------------------------------------------------------------
# Deterministic init + pure-JAX reference
# ---------------------------------------------------------------------------
def init_params(key):
    """Deterministic init mimicking PyTorch defaults (uniform +/- 1/sqrt(fan_in))."""
    dims = [(24, 128), (128, 64), (64, 16), (16, 4)]
    params = {}
    keys = jax.random.split(key, 4 * 2 + 3 * 4)
    k_iter = iter(keys)

    for li, (fin, fout) in enumerate(dims, start=1):
        bound = 1.0 / jnp.sqrt(jnp.float32(fin))
        params[f"w{li}"] = jax.random.uniform(next(k_iter), (fin, fout), jnp.float32, -bound, bound)
        params[f"b{li}"] = jax.random.uniform(next(k_iter), (1, fout), jnp.float32, -bound, bound)

    # BatchNorm1d (eval mode): fold (gamma, beta, running_mean, running_var, eps)
    # into a per-feature (scale, shift) pair.
    eps = 1e-5
    for li, n in zip((1, 2, 3), (128, 64, 16)):
        gamma = 1.0 + 0.1 * jax.random.normal(next(k_iter), (1, n), jnp.float32)
        beta = 0.1 * jax.random.normal(next(k_iter), (1, n), jnp.float32)
        running_mean = 0.05 * jax.random.normal(next(k_iter), (1, n), jnp.float32)
        running_var = jnp.abs(1.0 + 0.1 * jax.random.normal(next(k_iter), (1, n), jnp.float32))
        scale = gamma / jnp.sqrt(running_var + eps)
        shift = beta - running_mean * scale
        params[f"s{li}"] = scale
        params[f"t{li}"] = shift

    return params


def _reference_forward(x, params):
    """Pure-JAX f32 reference (un-folded BN) for a sanity check."""
    h = jnp.maximum(x @ params["w1"] + params["b1"], 0.0) * params["s1"] + params["t1"]
    h = jnp.maximum(h @ params["w2"] + params["b2"], 0.0) * params["s2"] + params["t2"]
    h = jnp.maximum(h @ params["w3"] + params["b3"], 0.0) * params["s3"] + params["t3"]
    logits = h @ params["w4"] + params["b4"]
    return jax.nn.softmax(logits, axis=-1)


if __name__ == "__main__":
    key = jax.random.PRNGKey(0)
    pkey, xkey, xkey2 = jax.random.split(key, 3)

    params = init_params(pkey)
    prepared = prepare_params(params)     # BN fold / transpose / bf16 cast done ONCE here

    # Tolerances are loosened vs. the f32 reference because matmul operands are bf16
    # and the softmax reciprocal uses the approximate EUP path.
    ATOL = 3e-2
    SUM_ATOL = 5e-3

    # Small case: batch=8, 24 keypoint features (single 128-lane tile).
    x = jax.random.normal(xkey, (8, 24), jnp.float32)
    out = jax.block_until_ready(classifier_kpts_forward(x, prepared))
    ref = _reference_forward(x, params)
    assert out.shape == (8, 4)
    assert jnp.allclose(jnp.sum(out, axis=-1), 1.0, atol=SUM_ATOL)
    assert jnp.allclose(out, ref, atol=ATOL)

    # Multi-tile + ragged-tail case: B=520, tile=128 -> 5 grid steps, 120 padded rows.
    x2 = jax.random.normal(xkey2, (520, 24), jnp.float32)
    out2 = jax.block_until_ready(classifier_kpts_forward(x2, prepared, tile_b=128))
    ref2 = _reference_forward(x2, params)
    assert out2.shape == (520, 4)
    assert jnp.allclose(jnp.sum(out2, axis=-1), 1.0, atol=SUM_ATOL)
    assert jnp.allclose(out2, ref2, atol=ATOL)

    # Default tile path: exercises the ">=2 grid steps" rebalancing (tb=384, 2 steps).
    out3 = jax.block_until_ready(classifier_kpts_forward(x2, prepared))
    assert out3.shape == (520, 4)
    assert jnp.allclose(out3, ref2, atol=ATOL)

    print("KERNEL_OK")
</pallas_src>

<mosaic_0001>
module attributes {stable_mosaic.version = 11 : i64} {
  func.func @_classifier_kernel(%arg0: i32, %arg1: memref<24x128xf32, #tpu.memory_space<vmem>>, %arg2: memref<128x24xbf16, #tpu.memory_space<vmem>>, %arg3: memref<128x1xf32, #tpu.memory_space<vmem>>, %arg4: memref<64x128xbf16, #tpu.memory_space<vmem>>, %arg5: memref<64x1xf32, #tpu.memory_space<vmem>>, %arg6: memref<16x64xbf16, #tpu.memory_space<vmem>>, %arg7: memref<16x1xf32, #tpu.memory_space<vmem>>, %arg8: memref<4x16xbf16, #tpu.memory_space<vmem>>, %arg9: memref<4x1xf32, #tpu.memory_space<vmem>>, %arg10: memref<4x128xf32, #tpu.memory_space<vmem>>) attributes {dimension_semantics = [#tpu.dimension_semantics<parallel>], iteration_bounds = array<i64: 1>, scalar_prefetch = 0 : i64, scratch_operands = 0 : i64, tpu.core_type = #tpu.core_type<tc>, window_params = [{transform_indices = @transform_0, window_bounds = array<i64: 24, 128>}, {pipeline_mode = #tpu.pipeline_mode<synchronous>, transform_indices = @transform_1, window_bounds = array<i64: 128, 24>}, {pipeline_mode = #tpu.pipeline_mode<synchronous>, transform_indices = @transform_2, window_bounds = array<i64: 128, 1>}, {pipeline_mode = #tpu.pipeline_mode<synchronous>, transform_indices = @transform_3, window_bounds = array<i64: 64, 128>}, {pipeline_mode = #tpu.pipeline_mode<synchronous>, transform_indices = @transform_4, window_bounds = array<i64: 64, 1>}, {pipeline_mode = #tpu.pipeline_mode<synchronous>, transform_indices = @transform_5, window_bounds = array<i64: 16, 64>}, {pipeline_mode = #tpu.pipeline_mode<synchronous>, transform_indices = @transform_6, window_bounds = array<i64: 16, 1>}, {pipeline_mode = #tpu.pipeline_mode<synchronous>, transform_indices = @transform_7, window_bounds = array<i64: 4, 16>}, {pipeline_mode = #tpu.pipeline_mode<synchronous>, transform_indices = @transform_8, window_bounds = array<i64: 4, 1>}, {transform_indices = @transform_9, window_bounds = array<i64: 4, 128>}]} {
    %c0 = arith.constant 0 : index
    %c0_0 = arith.constant 0 : index
    %0 = vector.load %arg1[%c0, %c0_0] : memref<24x128xf32, #tpu.memory_space<vmem>>, vector<24x128xf32>
    %1 = arith.truncf %0 : vector<24x128xf32> to vector<24x128xbf16>
    %c0_1 = arith.constant 0 : index
    %c0_2 = arith.constant 0 : index
    %2 = vector.load %arg2[%c0_1, %c0_2] : memref<128x24xbf16, #tpu.memory_space<vmem>>, vector<128x24xbf16>
    %cst = arith.constant dense<0.000000e+00> : vector<128x128xf32>
    %3 = tpu.matmul %2, %1, %cst {dimension_numbers = #tpu.dot_dimension_numbers<[1], [0], [0], [1], [0, 0, 1, 1], [], []>} : vector<128x24xbf16>, vector<24x128xbf16>, vector<128x128xf32> -> vector<128x128xf32>
    %c0_3 = arith.constant 0 : index
    %c0_4 = arith.constant 0 : index
    %4 = vector.load %arg3[%c0_3, %c0_4] : memref<128x1xf32, #tpu.memory_space<vmem>>, vector<128x1xf32>
    %5 = vector.broadcast %4 : vector<128x1xf32> to vector<128x128xf32>
    %6 = arith.addf %3, %5 : vector<128x128xf32>
    %cst_5 = arith.constant 0.000000e+00 : f32
    %7 = vector.broadcast %cst_5 : f32 to vector<128x128xf32>
    %8 = arith.maximumf %6, %7 : vector<128x128xf32>
    %c0_6 = arith.constant 0 : index
    %c0_7 = arith.constant 0 : index
    %9 = vector.load %arg4[%c0_6, %c0_7] : memref<64x128xbf16, #tpu.memory_space<vmem>>, vector<64x128xbf16>
    %10 = arith.truncf %8 : vector<128x128xf32> to vector<128x128xbf16>
    %cst_8 = arith.constant dense<0.000000e+00> : vector<64x128xf32>
    %11 = tpu.matmul %9, %10, %cst_8 {dimension_numbers = #tpu.dot_dimension_numbers<[1], [0], [0], [1], [0, 0, 1, 1], [], []>} : vector<64x128xbf16>, vector<128x128xbf16>, vector<64x128xf32> -> vector<64x128xf32>
    %c0_9 = arith.constant 0 : index
    %c0_10 = arith.constant 0 : index
    %12 = vector.load %arg5[%c0_9, %c0_10] : memref<64x1xf32, #tpu.memory_space<vmem>>, vector<64x1xf32>
    %13 = vector.broadcast %12 : vector<64x1xf32> to vector<64x128xf32>
    %14 = arith.addf %11, %13 : vector<64x128xf32>
    %cst_11 = arith.constant 0.000000e+00 : f32
    %15 = vector.broadcast %cst_11 : f32 to vector<64x128xf32>
    %16 = arith.maximumf %14, %15 : vector<64x128xf32>
    %c0_12 = arith.constant 0 : index
    %c0_13 = arith.constant 0 : index
    %17 = vector.load %arg6[%c0_12, %c0_13] : memref<16x64xbf16, #tpu.memory_space<vmem>>, vector<16x64xbf16>
    %18 = arith.truncf %16 : vector<64x128xf32> to vector<64x128xbf16>
    %cst_14 = arith.constant dense<0.000000e+00> : vector<16x128xf32>
    %19 = tpu.matmul %17, %18, %cst_14 {dimension_numbers = #tpu.dot_dimension_numbers<[1], [0], [0], [1], [0, 0, 1, 1], [], []>} : vector<16x64xbf16>, vector<64x128xbf16>, vector<16x128xf32> -> vector<16x128xf32>
    %c0_15 = arith.constant 0 : index
    %c0_16 = arith.constant 0 : index
    %20 = vector.load %arg7[%c0_15, %c0_16] : memref<16x1xf32, #tpu.memory_space<vmem>>, vector<16x1xf32>
    %21 = vector.broadcast %20 : vector<16x1xf32> to vector<16x128xf32>
    %22 = arith.addf %19, %21 : vector<16x128xf32>
    %cst_17 = arith.constant 0.000000e+00 : f32
    %23 = vector.broadcast %cst_17 : f32 to vector<16x128xf32>
    %24 = arith.maximumf %22, %23 : vector<16x128xf32>
    %c0_18 = arith.constant 0 : index
    %c0_19 = arith.constant 0 : index
    %25 = vector.load %arg8[%c0_18, %c0_19] : memref<4x16xbf16, #tpu.memory_space<vmem>>, vector<4x16xbf16>
    %26 = arith.truncf %24 : vector<16x128xf32> to vector<16x128xbf16>
    %cst_20 = arith.constant dense<0.000000e+00> : vector<4x128xf32>
    %27 = tpu.matmul %25, %26, %cst_20 {dimension_numbers = #tpu.dot_dimension_numbers<[1], [0], [0], [1], [0, 0, 1, 1], [], []>} : vector<4x16xbf16>, vector<16x128xbf16>, vector<4x128xf32> -> vector<4x128xf32>
    %c0_21 = arith.constant 0 : index
    %c0_22 = arith.constant 0 : index
    %28 = vector.load %arg9[%c0_21, %c0_22] : memref<4x1xf32, #tpu.memory_space<vmem>>, vector<4x1xf32>
    %29 = vector.broadcast %28 : vector<4x1xf32> to vector<4x128xf32>
    %30 = arith.addf %27, %29 : vector<4x128xf32>
    %cst_23 = arith.constant dense<0xFF800000> : vector<128xf32>
    %31 = vector.multi_reduction <maximumf>, %30, %cst_23 [0] : vector<4x128xf32> to vector<128xf32>
    %32 = vector.shape_cast %31 : vector<128xf32> to vector<1x128xf32>
    %33 = vector.broadcast %32 : vector<1x128xf32> to vector<4x128xf32>
    %34 = arith.subf %30, %33 : vector<4x128xf32>
    %35 = math.exp %34 : vector<4x128xf32>
    %cst_24 = arith.constant dense<0.000000e+00> : vector<128xf32>
    %36 = vector.multi_reduction <add>, %35, %cst_24 [0] : vector<4x128xf32> to vector<128xf32>
    %37 = vector.shape_cast %36 : vector<128xf32> to vector<1x128xf32>
    %38 = tpu.reciprocal %37 {approx = true} : vector<1x128xf32> -> vector<1x128xf32>
    %39 = vector.broadcast %38 : vector<1x128xf32> to vector<4x128xf32>
    %40 = arith.mulf %35, %39 : vector<4x128xf32>
    %c0_25 = arith.constant 0 : index
    %c0_26 = arith.constant 0 : index
    %41 = vector.load %arg10[%c0_25, %c0_26] : memref<4x128xf32, #tpu.memory_space<vmem>>, vector<4x128xf32>
    tpu.vector_store %arg10[%c0_25, %c0_26], %40 {strides = array<i32>} : memref<4x128xf32, #tpu.memory_space<vmem>>, vector<4x128xf32>,
    return
  }
  func.func @transform_0(%arg0: i32) -> (i32, i32) {
    %c0_i32 = arith.constant 0 : i32
    %c0_i32_0 = arith.constant 0 : i32
    return %c0_i32, %arg0 : i32, i32
  }
  func.func @transform_1(%arg0: i32) -> (i32, i32) {
    %c0_i32 = arith.constant 0 : i32
    %c0_i32_0 = arith.constant 0 : i32
    %c0_i32_1 = arith.constant 0 : i32
    return %c0_i32, %c0_i32_0 : i32, i32
  }
  func.func @transform_2(%arg0: i32) -> (i32, i32) {
    %c0_i32 = arith.constant 0 : i32
    %c0_i32_0 = arith.constant 0 : i32
    %c0_i32_1 = arith.constant 0 : i32
    return %c0_i32, %c0_i32_0 : i32, i32
  }
  func.func @transform_3(%arg0: i32) -> (i32, i32) {
    %c0_i32 = arith.constant 0 : i32
    %c0_i32_0 = arith.constant 0 : i32
    %c0_i32_1 = arith.constant 0 : i32
    return %c0_i32, %c0_i32_0 : i32, i32
  }
  func.func @transform_4(%arg0: i32) -> (i32, i32) {
    %c0_i32 = arith.constant 0 : i32
    %c0_i32_0 = arith.constant 0 : i32
    %c0_i32_1 = arith.constant 0 : i32
    return %c0_i32, %c0_i32_0 : i32, i32
  }
  func.func @transform_5(%arg0: i32) -> (i32, i32) {
    %c0_i32 = arith.constant 0 : i32
    %c0_i32_0 = arith.constant 0 : i32
    %c0_i32_1 = arith.constant 0 : i32
    return %c0_i32, %c0_i32_0 : i32, i32
  }
  func.func @transform_6(%arg0: i32) -> (i32, i32) {
    %c0_i32 = arith.constant 0 : i32
    %c0_i32_0 = arith.constant 0 : i32
    %c0_i32_1 = arith.constant 0 : i32
    return %c0_i32, %c0_i32_0 : i32, i32
  }
  func.func @transform_7(%arg0: i32) -> (i32, i32) {
    %c0_i32 = arith.constant 0 : i32
    %c0_i32_0 = arith.constant 0 : i32
    %c0_i32_1 = arith.constant 0 : i32
    return %c0_i32, %c0_i32_0 : i32, i32
  }
  func.func @transform_8(%arg0: i32) -> (i32, i32) {
    %c0_i32 = arith.constant 0 : i32
    %c0_i32_0 = arith.constant 0 : i32
    %c0_i32_1 = arith.constant 0 : i32
    return %c0_i32, %c0_i32_0 : i32, i32
  }
  func.func @transform_9(%arg0: i32) -> (i32, i32) {
    %c0_i32 = arith.constant 0 : i32
    %c0_i32_0 = arith.constant 0 : i32
    return %c0_i32, %arg0 : i32, i32
  }
}

</mosaic_0001>

<bundles_post_ra>
// kernel: classifier_kpts_forward.1
= control target key start
LH: loop header
LB: loop body
LE: loop exit
PB: predicated region body
PF: predicated region fallthrough
CT: control target
= control target key end

     0   :  { %vm190_vm0 = vcmask 195584   ;;  %v776_v3 = vmov 0   ;;  %vm215_vm1 = vcmask 1043456   ;;  %vm778_vm2 = vmmov 0   ;;  %s978_s0 = inlined_call_operand.vmem [shape: f32[24,128], index: 0, kind: input, shape index: {}]   ;;  %s979_s1 = inlined_call_operand.vmem [shape: bf16[128,24], index: 1, kind: input, shape index: {}]   ;;  %s980_s2 = inlined_call_operand.vmem [shape: f32[128,1], index: 2, kind: input, shape index: {}]   ;;  %s981_s4 = inlined_call_operand.vmem [shape: f32[64,1], index: 4, kind: input, shape index: {}]   ;;  %s982_s6 = inlined_call_operand.vmem [shape: f32[16,1], index: 6, kind: input, shape index: {}]   ;;  %s983_s8 = inlined_call_operand.vmem [shape: f32[4,1], index: 8, kind: input, shape index: {}]   ;;  %s984_s3 = inlined_call_operand.vmem [shape: bf16[64,128], index: 3, kind: input, shape index: {}]   ;;  %s985_s5 = inlined_call_operand.vmem [shape: bf16[16,64], index: 5, kind: input, shape index: {}]   ;;  %s986_s7 = inlined_call_operand.vmem [shape: bf16[4,16], index: 7, kind: input, shape index: {}]   ;;  %s987_s9 = inlined_call_operand.vmem [shape: f32[4,128], index: 9, kind: output, shape index: {}]  }
   0x1   :  { %v33_v0 = vld [vmem:[%s978_s0] sm:$0xff]  ;;  %v34_v1 = vld [vmem:[%s978_s0 + $0x8] sm:$0xff]  ;;  %v35_v2 = vld [vmem:[%s978_s0 + $0x10] sm:$0xff]  ;;  %757 = vset.pattern.permute.xlu0 %v776_v3  ;;  %758 = vset.pattern.permute.xlu1 %v776_v3  ;;  %vm516_vm3 = vcmask 523264   ;;  %vm571_vm4 = vcmask 130048  }
   0x2   :  { %v36_v4 = vpack.c.bf16 %v34_v1, %v33_v0  ;;  %v37_v5 = vpack.c.bf16 %v35_v2, %v35_v2  ;;  %v759_v6 = vld [vmem:[%s979_s1] sm:$0xff]   ;;  %v760_v8 = vld [vmem:[%s979_s1 + $0x8] sm:$0xff]   ;;  %v761_v9 = vld [vmem:[%s979_s1 + $0x10] sm:$0xff]  }
   0x3   :  { %695 = vmatprep.mubr.msk.bf16.mxu0 %vm190_vm0, %v759_v6  ;;  %v54_v10 = vld [vmem:[%s980_s2] sm:$0xff]  ;;  %v56_v11 = vld [vmem:[%s980_s2 + $0x10] sm:$0xff]  ;;  %v55_v12 = vld [vmem:[%s980_s2 + $0x8] sm:$0xff] }
   0x4   :  { %691 = vmatprep.subr.bf16.mxu0 %v36_v4  ;;  %v217_v7 = vsel %vm215_vm1, %v37_v5, 0  ;;  %72 = vperm.xlu0 %757, %v54_v10   ;;  %v57_v13 = vld [vmem:[%s980_s2 + $0x18] sm:$0xff]  ;;  %v58_v15 = vld [vmem:[%s980_s2 + $0x20] sm:$0xff]  ;;  %v59_v16 = vld [vmem:[%s980_s2 + $0x28] sm:$0xff] }
   0x5   :  { %692 = vmatpush3.bf16.msra.mxu0 %v36_v4  ;;  %82 = vperm.xlu1 %758, %v56_v11   ;;  %v762_v14 = vld [vmem:[%s979_s1 + $0x18] sm:$0xff]   ;;  %v763_v17 = vld [vmem:[%s979_s1 + $0x20] sm:$0xff]   ;;  %v60_v18 = vld [vmem:[%s980_s2 + $0x30] sm:$0xff] }
   0x6   :  { %753 = vmatprep.subr.msk.bf16.mxu0 %vm215_vm1, %v37_v5  ;;  %v61_v19 = vld [vmem:[%s980_s2 + $0x38] sm:$0xff]  ;;  %v764_v20 = vld [vmem:[%s979_s1 + $0x28] sm:$0xff]   ;;  %v62_v21 = vld [vmem:[%s980_s2 + $0x40] sm:$0xff] }
   0x7   :  { %v63_v22 = vld [vmem:[%s980_s2 + $0x48] sm:$0xff]  ;;  %v765_v23 = vld [vmem:[%s979_s1 + $0x30] sm:$0xff]   ;;  %v65_v25 = vld [vmem:[%s980_s2 + $0x58] sm:$0xff] }
   0x8   :  { %77 = vperm.xlu0 %757, %v55_v12   ;;  %v64_v24 = vld [vmem:[%s980_s2 + $0x50] sm:$0xff]  ;;  %v766_v26 = vld [vmem:[%s979_s1 + $0x38] sm:$0xff]   ;;  %v66_v27 = vld [vmem:[%s980_s2 + $0x60] sm:$0xff] }
   0x9   :  { %694 = vmatpush3.bf16.msra.mxu0 %v217_v7  ;;  %87 = vperm.xlu1 %758, %v57_v13   ;;  %v67_v28 = vld [vmem:[%s980_s2 + $0x68] sm:$0xff]  ;;  %v68_v29 = vld [vmem:[%s980_s2 + $0x70] sm:$0xff]  ;;  %v69_v30 = vld [vmem:[%s980_s2 + $0x78] sm:$0xff] }
   0xa   :  { %v348_v31 = vld [vmem:[%s981_s4] sm:$0xff]  ;;  %v349_v32 = vld [vmem:[%s981_s4 + $0x8] sm:$0xff]  ;;  %v350_v33 = vld [vmem:[%s981_s4 + $0x10] sm:$0xff] }
   0xb   :  { %v351_v34 = vld [vmem:[%s981_s4 + $0x18] sm:$0xff]  ;;  %v352_v35 = vld [vmem:[%s981_s4 + $0x20] sm:$0xff]  ;;  %v353_v36 = vld [vmem:[%s981_s4 + $0x28] sm:$0xff] }
   0xc   :  { %696 = vmatmul.mubr.msk.bf16.vlgmr.msra.gmra.mrb[0].mxu0 %vm190_vm0, %v760_v8  ;;  %92 = vperm.xlu0 %757, %v58_v15   ;;  %v354_v37 = vld [vmem:[%s981_s4 + $0x30] sm:$0xff]  ;;  %v355_v38 = vld [vmem:[%s981_s4 + $0x38] sm:$0xff]  ;;  %v499_v39 = vld [vmem:[%s982_s6] sm:$0xff] }
   0xd   :  { %699 = vmatprep.mubr.msk.bf16.mxu0 %vm190_vm0, %v761_v9  ;;  %97 = vperm.xlu1 %758, %v59_v16   ;;  %v500_v40 = vld [vmem:[%s982_s6 + $0x8] sm:$0xff]  ;;  %v565_v41 = vld [vmem:[%s983_s8] sm:$0xf] }
   0xe   :  { %v767_v42 = vld [vmem:[%s984_s3] sm:$0xff]  }
   0xf   :  { %727 = vmatprep.mubr.bf16.mxu1 %v767_v42 }
  0x10   :  { %102 = vperm.xlu0 %757, %v60_v18  }
  0x11   :  { %107 = vperm.xlu1 %758, %v61_v19  }
  0x14   :  { %700 = vmatmul.mubr.msk.bf16.gmra.mrb[4].mxu0 %vm190_vm0, %v762_v14  ;;  %112 = vperm.xlu0 %757, %v62_v21  }
  0x15   :  { %703 = vmatprep.mubr.msk.bf16.mxu0 %vm190_vm0, %v763_v17  ;;  %117 = vperm.xlu1 %758, %v63_v22  }
  0x18   :  { %122 = vperm.xlu0 %757, %v64_v24  }
  0x19   :  { %127 = vperm.xlu1 %758, %v65_v25  }
  0x1c   :  { %704 = vmatmul.mubr.msk.bf16.gmra.mrb[8].mxu0 %vm190_vm0, %v764_v20  ;;  %132 = vperm.xlu0 %757, %v66_v27  }
  0x1d   :  { %707 = vmatprep.mubr.msk.bf16.mxu0 %vm190_vm0, %v765_v23  ;;  %137 = vperm.xlu1 %758, %v67_v28  }
  0x20   :  { %142 = vperm.xlu0 %757, %v68_v29  }
  0x21   :  { %147 = vperm.xlu1 %758, %v69_v30  }
  0x24   :  { %708 = vmatmul.mubr.msk.bf16.gmra.mrb[12].mxu0 %vm190_vm0, %v766_v26  ;;  %358 = vperm.xlu0 %757, %v348_v31  }
  0x25   :  { %363 = vperm.xlu1 %758, %v349_v32  }
  0x28   :  { %368 = vperm.xlu0 %757, %v350_v33  }
  0x29   :  { %373 = vperm.xlu1 %758, %v351_v34  }
  0x2c   :  { %378 = vperm.xlu0 %757, %v352_v35  }
  0x2d   :  { %383 = vperm.xlu1 %758, %v353_v36  }
  0x30   :  { %388 = vperm.xlu0 %757, %v354_v37  }
  0x31   :  { %393 = vperm.xlu1 %758, %v355_v38  }
  0x34   :  { %503 = vperm.xlu0 %757, %v499_v39  }
  0x35   :  { %508 = vperm.xlu1 %758, %v500_v40  }
  0x38   :  { %568 = vperm.xlu0 %757, %v565_v41  }
  0x83   :  { %v73_v43 = vpop.permute.xlu0 %72 }
  0x84   :  { %v83_v44 = vpop.permute.xlu1 %82 }
  0x87   :  { %v78_v45 = vpop.permute.xlu0 %77 }
  0x88   :  { %v88_v46 = vpop.permute.xlu1 %87 }
  0x8b   :  { %v93_v47 = vpop.permute.xlu0 %92 }
  0x8c   :  { %v98_v48 = vpop.permute.xlu1 %97 }
  0x8f   :  { %v103_v49 = vpop.permute.xlu0 %102 }
  0x90   :  { %v108_v53 = vpop.permute.xlu1 %107 }
  0x93   :  { %v113_v61 = vpop.permute.xlu0 %112 }
  0x94   :  { %v118_v1 = vpop.permute.xlu1 %117 }
  0x97   :  { %v123_v10 = vpop.permute.xlu0 %122 }
  0x98   :  { %v128_v14 = vpop.permute.xlu1 %127 }
  0x9b   :  { %v133_v22 = vpop.permute.xlu0 %132 }
  0x9c   :  { %v138_v27 = vpop.permute.xlu1 %137 }
  0x9f   :  { %v143_v34 = vpop.permute.xlu0 %142 }
  0xa0   :  { %v148_v39 = vpop.permute.xlu1 %147 }
  0xdf   :  { %v697_v50 = vpop.f32.mrb[0].mxu0 }
  0xe0   :  { %v262_v51 = vadd.f32 %v697_v50, %v83_v44  ;;  %v253_v52 = vpop.f32.mrb[1].mxu0 }
  0xe1   :  { %v254_v54 = vadd.f32 %v253_v52, %v73_v43  ;;  %v698_v55 = vpop.f32.mrb[2].mxu0  ;;  %v769_v52 = vld [vmem:[%s984_s3 + $0x10] sm:$0xff]  }
  0xe2   :  { %v265_v56 = vadd.f32 %v698_v55, %v88_v46  ;;  %v256_v57 = vpop.f32.mrb[3].mxu0  ;;  %v318_v59 = vmax.f32 %v262_v51, 0.0  ;;  %v768_v51 = vld [vmem:[%s984_s3 + $0x8] sm:$0xff]   ;;  %v359_v55 = vpop.permute.xlu0 %358 }
  0xe3   :  { %v257_v58 = vadd.f32 %v256_v57, %v78_v45  ;;  %v316_v62 = vmax.f32 %v254_v54, 0.0  ;;  %v777_v54 = vmov 0.0  }
  0xe4   :  { %v319_v60 = vmax.f32 %v265_v56, 0.0  ;;  %735 = vmatprep.subr.bf16.mxu0 %v777_v54  ;;  %743 = vmatprep.mubr.msk.bf16.mxu0 %vm778_vm2, %v777_v54  ;;  %v364_v56 = vpop.permute.xlu1 %363 }
  0xe5   :  { %v317_v63 = vmax.f32 %v257_v58, 0.0 }
  0xe6   :  { %v341_v0 = vpack.c.bf16 %v319_v60, %v318_v59  ;;  %v369_v57 = vpop.permute.xlu0 %368 }
  0xe7   :  { %v701_v2 = vpop.f32.mrb[4].mxu0  ;;  %v340_v3 = vpack.c.bf16 %v317_v63, %v316_v62 }
  0xe8   :  { %v278_v4 = vadd.f32 %v701_v2, %v103_v49  ;;  %v269_v5 = vpop.f32.mrb[5].mxu0  ;;  %v374_v58 = vpop.permute.xlu1 %373 }
  0xe9   :  { %v270_v6 = vadd.f32 %v269_v5, %v93_v47  ;;  %v702_v7 = vpop.f32.mrb[6].mxu0  ;;  %711 = vmatprep.subr.bf16.mxu1 %v340_v3 }
  0xea   :  { %v281_v8 = vadd.f32 %v702_v7, %v108_v53  ;;  %v272_v9 = vpop.f32.mrb[7].mxu0  ;;  %712 = vmatpush3.bf16.msra.mxu1 %v340_v3  ;;  %v322_v12 = vmax.f32 %v278_v4, 0.0  ;;  %v770_v53 = vld [vmem:[%s984_s3 + $0x18] sm:$0xff]   ;;  %v379_v62 = vpop.permute.xlu0 %378 }
  0xeb   :  { %v273_v11 = vadd.f32 %v272_v9, %v98_v48  ;;  %713 = vmatprep.subr.bf16.mxu1 %v341_v0  ;;  %v320_v15 = vmax.f32 %v270_v6, 0.0 }
  0xec   :  { %v323_v13 = vmax.f32 %v281_v8, 0.0  ;;  %v384_v3 = vpop.permute.xlu1 %383 }
  0xed   :  { %v321_v16 = vmax.f32 %v273_v11, 0.0 }
  0xee   :  { %v343_v17 = vpack.c.bf16 %v323_v13, %v322_v12  ;;  %714 = vmatpush3.bf16.msra.mxu1 %v341_v0 }
  0xef   :  { %v342_v18 = vpack.c.bf16 %v321_v16, %v320_v15  ;;  %v705_v19 = vpop.f32.mrb[8].mxu0 }
  0xf0   :  { %v294_v20 = vadd.f32 %v705_v19, %v123_v10  ;;  %v285_v21 = vpop.f32.mrb[9].mxu0  ;;  %v389_v10 = vpop.permute.xlu0 %388 }
  0xf1   :  { %v286_v23 = vadd.f32 %v285_v21, %v113_v61  ;;  %v706_v24 = vpop.f32.mrb[10].mxu0  ;;  %715 = vmatprep.subr.bf16.mxu1 %v342_v18  ;;  %v394_v15 = vpop.permute.xlu1 %393 }
  0xf2   :  { %v297_v25 = vadd.f32 %v706_v24, %v128_v14  ;;  %v288_v26 = vpop.f32.mrb[11].mxu0  ;;  %716 = vmatpush3.bf16.msra.mxu1 %v342_v18  ;;  %v326_v29 = vmax.f32 %v294_v20, 0.0 }
  0xf3   :  { %v289_v28 = vadd.f32 %v288_v26, %v118_v1  ;;  %717 = vmatprep.subr.bf16.mxu1 %v343_v17  ;;  %v324_v31 = vmax.f32 %v286_v23, 0.0 }
  0xf4   :  { %v327_v30 = vmax.f32 %v297_v25, 0.0 }
  0xf5   :  { %v325_v32 = vmax.f32 %v289_v28, 0.0  ;;  %v504_v28 = vpop.permute.xlu0 %503 }
  0xf6   :  { %v345_v33 = vpack.c.bf16 %v327_v30, %v326_v29  ;;  %718 = vmatpush3.bf16.msra.mxu1 %v343_v17 }
  0xf7   :  { %v344_v35 = vpack.c.bf16 %v325_v32, %v324_v31  ;;  %v709_v36 = vpop.f32.mrb[12].mxu0  ;;  %v509_v32 = vpop.permute.xlu1 %508 }
  0xf8   :  { %v310_v37 = vadd.f32 %v709_v36, %v143_v34  ;;  %v301_v38 = vpop.f32.mrb[13].mxu0 }
  0xf9   :  { %v302_v40 = vadd.f32 %v301_v38, %v133_v22  ;;  %v710_v41 = vpop.f32.mrb[14].mxu0  ;;  %719 = vmatprep.subr.bf16.mxu1 %v344_v35 }
  0xfa   :  { %v313_v42 = vadd.f32 %v710_v41, %v148_v39  ;;  %v304_v43 = vpop.f32.mrb[15].mxu0  ;;  %720 = vmatpush3.bf16.msra.mxu1 %v344_v35  ;;  %v330_v45 = vmax.f32 %v310_v37, 0.0  ;;  %v563_v39 = vld [vmem:[%s986_s7] sm:$0x3] }
  0xfb   :  { %v305_v44 = vadd.f32 %v304_v43, %v138_v27  ;;  %721 = vmatprep.subr.bf16.mxu1 %v345_v33  ;;  %v328_v47 = vmax.f32 %v302_v40, 0.0  ;;  %v771_v27 = vld [vmem:[%s985_s5] sm:$0xff]   ;;  %v569_v40 = vpop.permute.xlu0 %568 }
  0xfc   :  { %v331_v46 = vmax.f32 %v313_v42, 0.0 }
  0xfd   :  { %v329_v48 = vmax.f32 %v305_v44, 0.0 }
  0xfe   :  { %v347_v49 = vpack.c.bf16 %v331_v46, %v330_v45  ;;  %722 = vmatpush3.bf16.msra.mxu1 %v345_v33 }
  0xff   :  { %v346_v50 = vpack.c.bf16 %v329_v48, %v328_v47 }
 0x101   :  { %723 = vmatprep.subr.bf16.mxu1 %v346_v50 }
 0x102   :  { %724 = vmatpush3.bf16.msra.mxu1 %v346_v50 }
 0x103   :  { %725 = vmatprep.subr.bf16.mxu1 %v347_v49 }
 0x106   :  { %726 = vmatpush3.bf16.msra.mxu1 %v347_v49 }
 0x109   :  { %728 = vmatmul.mubr.bf16.vlgmr.msra.gmra.mrb[0].mxu1 %v768_v51 }
 0x10a   :  { %731 = vmatprep.mubr.bf16.mxu1 %v769_v52 }
 0x111   :  { %732 = vmatmul.mubr.bf16.gmra.mrb[4].mxu1 %v770_v53 }
 0x1dc   :  { %v729_v59 = vpop.f32.mrb[0].mxu1 }
 0x1dd   :  { %v463_v60 = vadd.f32 %v729_v59, %v369_v57  ;;  %v454_v61 = vpop.f32.mrb[1].mxu1 }
 0x1de   :  { %v455_v63 = vadd.f32 %v454_v61, %v359_v55  ;;  %v730_v0 = vpop.f32.mrb[2].mxu1 }
 0x1df   :  { %v466_v1 = vadd.f32 %v730_v0, %v374_v58  ;;  %v457_v2 = vpop.f32.mrb[3].mxu1  ;;  %v487_v5 = vmax.f32 %v463_v60, 0.0 }
 0x1e0   :  { %v458_v4 = vadd.f32 %v457_v2, %v364_v56  ;;  %v485_v7 = vmax.f32 %v455_v63, 0.0 }
 0x1e1   :  { %v488_v6 = vmax.f32 %v466_v1, 0.0 }
 0x1e2   :  { %v486_v8 = vmax.f32 %v458_v4, 0.0 }
 0x1e3   :  { %v496_v9 = vpack.c.bf16 %v488_v6, %v487_v5 }
 0x1e4   :  { %v495_v11 = vpack.c.bf16 %v486_v8, %v485_v7  ;;  %v733_v12 = vpop.f32.mrb[4].mxu1 }
 0x1e5   :  { %v479_v13 = vadd.f32 %v733_v12, %v389_v10  ;;  %v470_v14 = vpop.f32.mrb[5].mxu1 }
 0x1e6   :  { %v471_v16 = vadd.f32 %v470_v14, %v379_v62  ;;  %v734_v17 = vpop.f32.mrb[6].mxu1  ;;  %736 = vmatpush3.bf16.msra.mxu0 %v495_v11 }
 0x1e7   :  { %v482_v18 = vadd.f32 %v734_v17, %v394_v15  ;;  %v473_v19 = vpop.f32.mrb[7].mxu1  ;;  %737 = vmatprep.subr.bf16.mxu0 %v777_v54  ;;  %v491_v21 = vmax.f32 %v479_v13, 0.0 }
 0x1e8   :  { %v474_v20 = vadd.f32 %v473_v19, %v384_v3  ;;  %v489_v23 = vmax.f32 %v471_v16, 0.0 }
 0x1e9   :  { %v492_v22 = vmax.f32 %v482_v18, 0.0 }
 0x1ea   :  { %v490_v24 = vmax.f32 %v474_v20, 0.0  ;;  %738 = vmatpush3.bf16.msra.mxu0 %v496_v9 }
 0x1eb   :  { %v498_v25 = vpack.c.bf16 %v492_v22, %v491_v21  ;;  %739 = vmatprep.subr.bf16.mxu0 %v777_v54 }
 0x1ec   :  { %v497_v26 = vpack.c.bf16 %v490_v24, %v489_v23 }
 0x1ee   :  { %740 = vmatpush3.bf16.msra.mxu0 %v497_v26 }
 0x1ef   :  { %741 = vmatprep.subr.bf16.mxu0 %v777_v54 }
 0x1f2   :  { %742 = vmatpush3.bf16.msra.mxu0 %v498_v25 }
 0x1f3   :  { %747 = vmatprep.subr.bf16.mxu0 %v777_v54 }
 0x1f5   :  { %744 = vmatmul.mubr.msk.bf16.vlgmr.msra.gmra.mrb[16].mxu0 %vm516_vm3, %v771_v27 }
 0x1f6   :  { %749 = vmatprep.mubr.msk.bf16.mxu0 %vm778_vm2, %v777_v54 }
 0x2c8   :  { %v554_v29 = vpop.f32.mrb[16].mxu0 }
 0x2c9   :  { %v555_v30 = vadd.f32 %v554_v29, %v504_v28  ;;  %v745_v31 = vpop.f32.mrb[17].mxu0 }
 0x2ca   :  { %v557_v33 = vpop.f32.mrb[18].mxu0 }
 0x2cb   :  { %v558_v34 = vadd.f32 %v557_v33, %v509_v32  ;;  %v746_v35 = vpop.f32.mrb[19].mxu0  ;;  %v561_v36 = vmax.f32 %v555_v30, 0.0 }
 0x2cd   :  { %v562_v37 = vmax.f32 %v558_v34, 0.0 }
 0x2cf   :  { %v564_v38 = vpack.c.bf16 %v562_v37, %v561_v36 }
 0x2d1   :  { %748 = vmatpush3.bf16.msra.mxu0 %v564_v38 }
 0x2d4   :  { %750 = vmatmul.mubr.msk.bf16.vlgmr.msra.gmra.mrb[20].mxu0 %vm571_vm4, %v563_v39 }
 0x3a7   :  { %v609_v41 = vpop.f32.mrb[20].mxu0 }
 0x3a8   :  { %v610_v42 = vadd.f32 %v609_v41, %v569_v40  ;;  %v751_v43 = vpop.f32.mrb[21].mxu0 }
 0x3a9   :  { %v612_v44 = vpop.f32.mrb[22].mxu0 }
 0x3aa   :  { %v615_v45 = vsel %vm215_vm1, %v610_v42, -inf  ;;  %v752_v46 = vpop.f32.mrb[23].mxu0 }
 0x3ab   :  { %v616_v47 = vrot.slane %v615_v45, 4 }
 0x3ad   :  { %v617_v48 = vmax.f32 %v615_v45, %v616_v47 }
 0x3af   :  { %v618_v49 = vrot.slane %v617_v48, 2 }
 0x3b1   :  { %v619_v50 = vmax.f32 %v617_v48, %v618_v49 }
 0x3b3   :  { %v620_v51 = vrot.slane %v619_v50, 1 }
 0x3b5   :  { %v621_v52 = vmax.f32 %v619_v50, %v620_v51 }
 0x3b7   :  { %v622_v53 = vsub.f32 %v610_v42, %v621_v52 }
 0x3b9   :  { %v623_v54 = vmul.f32 1.442695, %v622_v53 }
 0x3bb   :  { %772 = vpow2.f32 %v623_v54 }
 0x3c5   :  { %v773_v55 = vpop.eup %772 }
 0x3c6   :  { %v625_v56 = vsel %vm215_vm1, %v773_v55, 0.0 }
 0x3c7   :  { %v626_v57 = vrot.slane %v625_v56, 4 }
 0x3c9   :  { %v627_v58 = vadd.f32 %v626_v57, %v625_v56 }
 0x3cb   :  { %v628_v59 = vrot.slane %v627_v58, 2 }
 0x3cd   :  { %v629_v60 = vadd.f32 %v628_v59, %v627_v58 }
 0x3cf   :  { %v630_v61 = vrot.slane %v629_v60, 1 }
 0x3d1   :  { %v631_v62 = vadd.f32 %v630_v61, %v629_v60 }
 0x3d3   :  { %774 = vrcp.f32 %v631_v62 }
 0x3dd   :  { %v775_v63 = vpop.eup %774 }
 0x3de   :  { %v633_v0 = vmul.f32 %v775_v63, %v773_v55 }
 0x3e0   :  { %634 = vst [vmem:[%s987_s9] sm:$0xf] %v633_v0 }

</bundles_post_ra>
